<compile_context>
chip_gen: v7x
topology: tpu7x:2x2x1
jax: 0.10.0
libtpu: 0.0.40
codegen_flags: <defaults>
</compile_context>

<pallas_src>
import math
from functools import partial

import jax
import jax.numpy as jnp
from jax import lax
from jax.experimental import pallas as pl
from jax.experimental.pallas import tpu as pltpu


def noisy_linear_kernel(x_ref, w_ref, nw_ref, in_noise_ref, onb_ref, o_ref):
    """Grid = (B-tiles, N-tiles, K-tiles); K (reduction) is last and 'arbitrary'.

    x_ref        : [tm, tk]  activations (f32, or bf16 when use_bf16_matmul)
    w_ref        : [tn, tk]  weight tile, native [out, in] layout
    nw_ref       : [tn, tk]  noisy_weight tile, native [out, in] layout
    in_noise_ref : [1, tk]   f32
    onb_ref      : [3, tn]   rows = (out_noise, bias, noisy_bias), f32
    o_ref        : [tm, tn]  f32 output block, VMEM-resident across the K axis
    """
    k = pl.program_id(2)

    onb = onb_ref[...]
    on = onb[0:1, :]                                       # out_noise  [1, tn]

    @pl.when(k == 0)
    def _():
        # Initialize the resident output block with the effective bias.
        b_eff = onb[1:2, :] + onb[2:3, :] * on             # bias + noisy_bias*out_noise
        o_ref[...] = jnp.broadcast_to(b_eff, o_ref.shape)

    x = x_ref[...]                                         # [tm, tk]
    # Factorised-noise identity: x @ (NW*outer(on,inn))^T == on * ((x*inn) @ NW^T)
    # Keep elementwise math in f32 (v5e has no bf16 VPU path).
    xn = (x.astype(jnp.float32) * in_noise_ref[...]).astype(x.dtype)

    dn = (((1,), (1,)), ((), ()))                          # contract K dims: x @ w^T
    o_ref[...] += (
        lax.dot_general(x, w_ref[...], dn, preferred_element_type=jnp.float32)
        + on * lax.dot_general(xn, nw_ref[...], dn, preferred_element_type=jnp.float32)
    )


def _round_up(v, m):
    return ((v + m - 1) // m) * m


def _pick_tile(dim, cap, granule):
    """Largest multiple of `granule` that divides `dim` (a granule multiple) and is <= cap."""
    best = granule
    t = granule
    limit = min(cap, dim)
    while t <= limit:
        if dim % t == 0:
            best = t
        t += granule
    return best


def _default_vmem_limit_bytes():
    # Generation-aware scoped-VMEM budget: ~3/4 of physical per-core VMEM, capped
    # at 96 MiB  (=> ~48 MiB on v7x's 64 MiB, ~96 MiB on v5e/v6e's 128 MiB).
    try:
        cap = int(pltpu.get_tpu_info().vmem_capacity_bytes)
        return min(96 * 1024 * 1024, (cap * 3) // 4)
    except Exception:
        return 48 * 1024 * 1024


@partial(jax.jit,
         static_argnames=("tm_max", "tn_max", "tk_max",
                          "use_bf16_matmul", "vmem_limit_bytes"))
def noisy_linear_forward(x, weight, bias, noisy_weight, noisy_bias,
                         in_noise, out_noise, *,
                         tm_max=512, tn_max=512, tk_max=1024,
                         use_bf16_matmul=False, vmem_limit_bytes=None):
    """x: [B, in]; weight/noisy_weight: [out, in] (native layout, never transposed);
    bias/noisy_bias/out_noise: [out]; in_noise: [in].  Returns [B, out] float32."""
    B, K = x.shape
    N = weight.shape[0]

    if vmem_limit_bytes is None:
        vmem_limit_bytes = _default_vmem_limit_bytes()

    # Pad only to layout granules (8 sublanes / 128 lanes) — never to a full tile.
    Bp, Np, Kp = _round_up(B, 8), _round_up(N, 128), _round_up(K, 128)

    # Adaptive tiles: largest granule-multiples dividing the padded dims, <= caps.
    tm = _pick_tile(Bp, tm_max, 8)
    tn = _pick_tile(Np, tn_max, 128)
    tk = _pick_tile(Kp, tk_max, 128)

    # v7x has 2 TensorCores fed by the "parallel" grid axes: guarantee >= 2
    # parallel blocks whenever the shapes allow it.
    if (Bp // tm) * (Np // tn) == 1:
        if Np >= 256:
            tn = _pick_tile(Np, Np // 2, 128)
        elif Bp >= 16:
            tm = _pick_tile(Bp, Bp // 2, 8)

    mm_dtype = jnp.bfloat16 if use_bf16_matmul else x.dtype

    # Zero-pad (padded K columns / N rows contribute nothing; sliced off below).
    xp = jnp.pad(x, ((0, Bp - B), (0, Kp - K))).astype(mm_dtype)
    wp = jnp.pad(weight, ((0, Np - N), (0, Kp - K))).astype(mm_dtype)        # [Np, Kp]
    nwp = jnp.pad(noisy_weight, ((0, Np - N), (0, Kp - K))).astype(mm_dtype)  # [Np, Kp]
    inp = jnp.pad(in_noise.astype(jnp.float32).reshape(1, K),
                  ((0, 0), (0, Kp - K)))                                      # [1, Kp]
    onb = jnp.pad(jnp.stack([out_noise, bias, noisy_bias]).astype(jnp.float32),
                  ((0, 0), (0, Np - N)))                                      # [3, Np]

    grid = (Bp // tm, Np // tn, Kp // tk)

    out = pl.pallas_call(
        noisy_linear_kernel,
        out_shape=jax.ShapeDtypeStruct((Bp, Np), jnp.float32),
        grid_spec=pltpu.PrefetchScalarGridSpec(
            num_scalar_prefetch=0,
            grid=grid,
            in_specs=[
                pl.BlockSpec((tm, tk), lambda i, j, k: (i, k)),   # x            [M, K]
                pl.BlockSpec((tn, tk), lambda i, j, k: (j, k)),   # weight       [N, K]
                pl.BlockSpec((tn, tk), lambda i, j, k: (j, k)),   # noisy_weight [N, K]
                pl.BlockSpec((1, tk), lambda i, j, k: (0, k)),    # in_noise
                pl.BlockSpec((3, tn), lambda i, j, k: (0, j)),    # out_noise/bias/noisy_bias
            ],
            out_specs=pl.BlockSpec((tm, tn), lambda i, j, k: (i, j)),
        ),
        compiler_params=pltpu.CompilerParams(
            dimension_semantics=("parallel", "parallel", "arbitrary"),
            vmem_limit_bytes=vmem_limit_bytes,
        ),
    )(xp, wp, nwp, inp, onb)

    return out[:B, :N]


def reference_forward(x, weight, bias, noisy_weight, noisy_bias, in_noise, out_noise):
    noise = jnp.outer(out_noise, in_noise)                # [out, in]
    normal_y = x @ weight.T + bias
    noisy_y = x @ (noisy_weight * noise).T + noisy_bias * out_noise
    return noisy_y + normal_y


def _make_inputs(key, batch, in_features, out_features, sigma0=0.5):
    # Matches NoisyLinear.reset_parameters() + sample_noise().
    noise_std = sigma0 / math.sqrt(in_features)
    stdv = 1.0 / math.sqrt(in_features)
    k_x, k_w, k_b, k_nw, k_nb, k_in, k_out = jax.random.split(key, 7)
    x = jax.random.normal(k_x, (batch, in_features), dtype=jnp.float32)
    weight = jax.random.uniform(k_w, (out_features, in_features),
                                minval=-stdv, maxval=stdv, dtype=jnp.float32)
    bias = jax.random.uniform(k_b, (out_features,),
                              minval=-stdv, maxval=stdv, dtype=jnp.float32)
    noisy_weight = jax.random.uniform(k_nw, (out_features, in_features),
                                      minval=-stdv, maxval=stdv, dtype=jnp.float32)
    noisy_bias = jax.random.uniform(k_nb, (out_features,),
                                    minval=-stdv, maxval=stdv, dtype=jnp.float32)
    # TODO(synk): training-mode sample_noise() RNG stays outside the kernel; the
    # noise vectors are passed in and the [out,in] noise buffer is never built.
    in_noise = noise_std * jax.random.normal(k_in, (in_features,), dtype=jnp.float32)
    out_noise = noise_std * jax.random.normal(k_out, (out_features,), dtype=jnp.float32)
    return x, weight, bias, noisy_weight, noisy_bias, in_noise, out_noise


if __name__ == "__main__":
    key = jax.random.PRNGKey(0)
    k1, k2 = jax.random.split(key)

    # Case 1: small, single-block grid (typical small-layer usage).
    args1 = _make_inputs(k1, batch=8, in_features=32, out_features=64)
    y1 = jax.block_until_ready(noisy_linear_forward(*args1))
    y1_ref = reference_forward(*args1)
    assert y1.shape == (8, 64)
    assert jnp.allclose(y1, y1_ref, atol=1e-5, rtol=1e-5), "case 1 mismatch vs reference"

    # Case 2: small tile caps force a multi-block grid (2 x 3 x 3) so the
    # K-accumulation path (pl.when init across K blocks) and multi-tile output
    # writeback are actually exercised.
    args2 = _make_inputs(k2, batch=16, in_features=384, out_features=320)
    y2 = jax.block_until_ready(
        noisy_linear_forward(*args2, tm_max=8, tn_max=128, tk_max=128))
    y2_ref = reference_forward(*args2)
    assert y2.shape == (16, 320)
    assert jnp.allclose(y2, y2_ref, atol=1e-4, rtol=1e-4), "case 2 mismatch vs reference"

    print("KERNEL_OK")
</pallas_src>

<mosaic_0001>
module attributes {stable_mosaic.version = 11 : i64} {
  func.func @noisy_linear_kernel(%arg0: i32, %arg1: i32, %arg2: i32, %arg3: memref<8x128xf32, #tpu.memory_space<vmem>>, %arg4: memref<128x128xf32, #tpu.memory_space<vmem>>, %arg5: memref<128x128xf32, #tpu.memory_space<vmem>>, %arg6: memref<1x128xf32, #tpu.memory_space<vmem>>, %arg7: memref<3x128xf32, #tpu.memory_space<vmem>>, %arg8: memref<8x128xf32, #tpu.memory_space<vmem>>) attributes {dimension_semantics = [#tpu.dimension_semantics<parallel>, #tpu.dimension_semantics<parallel>, #tpu.dimension_semantics<arbitrary>], iteration_bounds = array<i64: 1, 1, 1>, scalar_prefetch = 0 : i64, scratch_operands = 0 : i64, tpu.core_type = #tpu.core_type<tc>, window_params = [{transform_indices = @transform_0, window_bounds = array<i64: 8, 128>}, {transform_indices = @transform_1, window_bounds = array<i64: 128, 128>}, {transform_indices = @transform_2, window_bounds = array<i64: 128, 128>}, {transform_indices = @transform_3, window_bounds = array<i64: 1, 128>}, {transform_indices = @transform_4, window_bounds = array<i64: 3, 128>}, {transform_indices = @transform_5, window_bounds = array<i64: 8, 128>}]} {
    %c0 = arith.constant 0 : index
    %c0_0 = arith.constant 0 : index
    %0 = vector.load %arg7[%c0, %c0_0] : memref<3x128xf32, #tpu.memory_space<vmem>>, vector<3x128xf32>
    %1 = vector.extract_strided_slice %0 {offsets = [0, 0], sizes = [1, 128], strides = [1, 1]} : vector<3x128xf32> to vector<1x128xf32>
    %c0_i32 = arith.constant 0 : i32
    %2 = arith.cmpi eq, %arg2, %c0_i32 : i32
    %3 = arith.extui %2 : i1 to i32
    %c0_i32_1 = arith.constant 0 : i32
    %4 = arith.cmpi ne, %3, %c0_i32_1 : i32
    scf.if %4 {
      %19 = vector.extract_strided_slice %0 {offsets = [1, 0], sizes = [1, 128], strides = [1, 1]} : vector<3x128xf32> to vector<1x128xf32>
      %20 = vector.extract_strided_slice %0 {offsets = [2, 0], sizes = [1, 128], strides = [1, 1]} : vector<3x128xf32> to vector<1x128xf32>
      %21 = arith.mulf %20, %1 : vector<1x128xf32>
      %22 = arith.addf %19, %21 : vector<1x128xf32>
      %23 = vector.shape_cast %22 : vector<1x128xf32> to vector<1x128xf32>
      %24 = vector.broadcast %23 : vector<1x128xf32> to vector<8x128xf32>
      %c0_15 = arith.constant 0 : index
      %c0_16 = arith.constant 0 : index
      %25 = vector.load %arg8[%c0_15, %c0_16] : memref<8x128xf32, #tpu.memory_space<vmem>>, vector<8x128xf32>
      tpu.vector_store %arg8[%c0_15, %c0_16], %24 {strides = array<i32>} : memref<8x128xf32, #tpu.memory_space<vmem>>, vector<8x128xf32>,
    } else {
    }
    %c0_2 = arith.constant 0 : index
    %c0_3 = arith.constant 0 : index
    %5 = vector.load %arg3[%c0_2, %c0_3] : memref<8x128xf32, #tpu.memory_space<vmem>>, vector<8x128xf32>
    %c0_4 = arith.constant 0 : index
    %c0_5 = arith.constant 0 : index
    %6 = vector.load %arg6[%c0_4, %c0_5] : memref<1x128xf32, #tpu.memory_space<vmem>>, vector<1x128xf32>
    %7 = vector.broadcast %6 : vector<1x128xf32> to vector<8x128xf32>
    %8 = arith.mulf %5, %7 : vector<8x128xf32>
    %c0_6 = arith.constant 0 : index
    %c0_7 = arith.constant 0 : index
    %9 = vector.load %arg8[%c0_6, %c0_7] : memref<8x128xf32, #tpu.memory_space<vmem>>, vector<8x128xf32>
    %c0_8 = arith.constant 0 : index
    %c0_9 = arith.constant 0 : index
    %10 = vector.load %arg4[%c0_8, %c0_9] : memref<128x128xf32, #tpu.memory_space<vmem>>, vector<128x128xf32>
    %cst = arith.constant dense<0.000000e+00> : vector<8x128xf32>
    %11 = tpu.matmul %5, %10, %cst {dimension_numbers = #tpu.dot_dimension_numbers<[1], [1], [0], [0], [0, 0, 1, 0], [], []>} : vector<8x128xf32>, vector<128x128xf32>, vector<8x128xf32> -> vector<8x128xf32>
    %c0_10 = arith.constant 0 : index
    %c0_11 = arith.constant 0 : index
    %12 = vector.load %arg5[%c0_10, %c0_11] : memref<128x128xf32, #tpu.memory_space<vmem>>, vector<128x128xf32>
    %cst_12 = arith.constant dense<0.000000e+00> : vector<8x128xf32>
    %13 = tpu.matmul %8, %12, %cst_12 {dimension_numbers = #tpu.dot_dimension_numbers<[1], [1], [0], [0], [0, 0, 1, 0], [], []>} : vector<8x128xf32>, vector<128x128xf32>, vector<8x128xf32> -> vector<8x128xf32>
    %14 = vector.broadcast %1 : vector<1x128xf32> to vector<8x128xf32>
    %15 = arith.mulf %14, %13 : vector<8x128xf32>
    %16 = arith.addf %11, %15 : vector<8x128xf32>
    %17 = arith.addf %9, %16 : vector<8x128xf32>
    %c0_13 = arith.constant 0 : index
    %c0_14 = arith.constant 0 : index
    %18 = vector.load %arg8[%c0_13, %c0_14] : memref<8x128xf32, #tpu.memory_space<vmem>>, vector<8x128xf32>
    tpu.vector_store %arg8[%c0_13, %c0_14], %17 {strides = array<i32>} : memref<8x128xf32, #tpu.memory_space<vmem>>, vector<8x128xf32>,
    return
  }
  func.func @transform_0(%arg0: i32, %arg1: i32, %arg2: i32) -> (i32, i32) {
    %c0_i32 = arith.constant 0 : i32
    return %arg0, %arg2 : i32, i32
  }
  func.func @transform_1(%arg0: i32, %arg1: i32, %arg2: i32) -> (i32, i32) {
    %c0_i32 = arith.constant 0 : i32
    return %arg1, %arg2 : i32, i32
  }
  func.func @transform_2(%arg0: i32, %arg1: i32, %arg2: i32) -> (i32, i32) {
    %c0_i32 = arith.constant 0 : i32
    return %arg1, %arg2 : i32, i32
  }
  func.func @transform_3(%arg0: i32, %arg1: i32, %arg2: i32) -> (i32, i32) {
    %c0_i32 = arith.constant 0 : i32
    %c0_i32_0 = arith.constant 0 : i32
    return %c0_i32, %arg2 : i32, i32
  }
  func.func @transform_4(%arg0: i32, %arg1: i32, %arg2: i32) -> (i32, i32) {
    %c0_i32 = arith.constant 0 : i32
    %c0_i32_0 = arith.constant 0 : i32
    return %c0_i32, %arg1 : i32, i32
  }
  func.func @transform_5(%arg0: i32, %arg1: i32, %arg2: i32) -> (i32, i32) {
    %c0_i32 = arith.constant 0 : i32
    return %arg0, %arg1 : i32, i32
  }
}

</mosaic_0001>

<bundles_post_ra>
// kernel: noisy_linear_forward.1
= control target key start
LH: loop header
LB: loop body
LE: loop exit
PB: predicated region body
PF: predicated region fallthrough
CT: control target
= control target key end

     0   :  { %v423_v3 = vmov 0.0|0.0   ;;  %vm424_vm0 = vmmov 0   ;;  %v425_v7 = vmov 0.0   ;;  %s590_s0 = inlined_call_operand.vmem [shape: f32[8,128], index: 0, kind: input, shape index: {}]   ;;  %s591_s1 = inlined_call_operand.vmem [shape: f32[128,128], index: 1, kind: input, shape index: {}]   ;;  %s592_s2 = inlined_call_operand.vmem [shape: f32[128,128], index: 2, kind: input, shape index: {}]   ;;  %s593_s3 = inlined_call_operand.vmem [shape: f32[1,128], index: 3, kind: input, shape index: {}]   ;;  %s594_s4 = inlined_call_operand.vmem [shape: f32[3,128], index: 4, kind: input, shape index: {}]   ;;  %s595_s5 = inlined_call_operand.hbm [shape: f32[8,128], index: 5, kind: output, shape index: {}]  }
   0x1   :  { %v65_v0 = vld [vmem:[%s592_s2] sm:$0xff]  ;;  %v66_v1 = vld [vmem:[%s592_s2 + $0x8] sm:$0xff]  ;;  %347 = vmatprep.subr.bf16.mxu0 %v423_v3  ;;  %371 = vmatprep.subr.bf16.mxu1 %v423_v3  ;;  %v67_v8 = vld [vmem:[%s592_s2 + $0x10] sm:$0xff] }
   0x2   :  { %v49_v2 = vld [vmem:[%s591_s1] sm:$0xff]  ;;  %v348_v4 = vpack.c.bf16 %v66_v1, %v65_v0  ;;  %v50_v5 = vld [vmem:[%s591_s1 + $0x8] sm:$0xff]  ;;  %309 = vmatprep.mubr.msk.f32.mxu0 %vm424_vm0, %v425_v7  ;;  %344 = vmatprep.mubr.msk.f32.mxu1 %vm424_vm0, %v425_v7  ;;  %v68_v9 = vld [vmem:[%s592_s2 + $0x18] sm:$0xff] }
   0x3   :  { %v372_v6 = vpack.c.bf16 %v50_v5, %v49_v2  ;;  %v51_v10 = vld [vmem:[%s591_s1 + $0x10] sm:$0xff]  ;;  %v52_v11 = vld [vmem:[%s591_s1 + $0x18] sm:$0xff]  ;;  %v351_v12 = vpack.c.bf16 %v68_v9, %v67_v8 }
   0x4   :  { %349 = vmatpush3.bf16.xpose.msra.mxu0 %v348_v4  ;;  %v375_v13 = vpack.c.bf16 %v52_v11, %v51_v10 }
   0x5   :  { %373 = vmatpush3.bf16.xpose.msra.mxu1 %v372_v6  ;;  %350 = vmatprep.subr.bf16.mxu0 %v423_v3 }
   0x6   :  { %374 = vmatprep.subr.bf16.mxu1 %v423_v3 }
   0xc   :  { %352 = vmatpush3.bf16.xpose.msra.mxu0 %v351_v12 }
   0xd   :  { %10 = vsyncpa [#allocation3], 0  ;;  %376 = vmatpush3.bf16.xpose.msra.mxu1 %v375_v13  ;;  %353 = vmatprep.subr.bf16.mxu0 %v423_v3  ;;  %v69_v14 = vld [vmem:[%s592_s2 + $0x20] sm:$0xff]  ;;  %v70_v15 = vld [vmem:[%s592_s2 + $0x28] sm:$0xff]  ;;  %v34_v55 = vlaneseq }
   0xe   :  { %377 = vmatprep.subr.bf16.mxu1 %v423_v3  ;;  %v53_v16 = vld [vmem:[%s591_s1 + $0x20] sm:$0xff]  ;;  %v54_v17 = vld [vmem:[%s591_s1 + $0x28] sm:$0xff]  ;;  %v354_v18 = vpack.c.bf16 %v70_v15, %v69_v14  ;;  %v71_v20 = vld [vmem:[%s592_s2 + $0x30] sm:$0xff] }
   0xf   :  { %v378_v19 = vpack.c.bf16 %v54_v17, %v53_v16  ;;  %v72_v21 = vld [vmem:[%s592_s2 + $0x38] sm:$0xff]  ;;  %v55_v22 = vld [vmem:[%s591_s1 + $0x30] sm:$0xff]  ;;  %v73_v26 = vld [vmem:[%s592_s2 + $0x40] sm:$0xff]  ;;  %v35_v57 = vshrl.u32 %v34_v55, 7 }
  0x10   :  { %v56_v23 = vld [vmem:[%s591_s1 + $0x38] sm:$0xff]  ;;  %v357_v24 = vpack.c.bf16 %v72_v21, %v71_v20  ;;  %v74_v27 = vld [vmem:[%s592_s2 + $0x48] sm:$0xff]  ;;  %v57_v28 = vld [vmem:[%s591_s1 + $0x40] sm:$0xff] }
  0x11   :  { %v381_v25 = vpack.c.bf16 %v56_v23, %v55_v22  ;;  %v58_v29 = vld [vmem:[%s591_s1 + $0x48] sm:$0xff]  ;;  %v360_v30 = vpack.c.bf16 %v74_v27, %v73_v26  ;;  %v75_v32 = vld [vmem:[%s592_s2 + $0x50] sm:$0xff]  ;;  %v76_v33 = vld [vmem:[%s592_s2 + $0x58] sm:$0xff]  ;;  %v153_v59 = vsub.s32 0, %v35_v57  ;;  %v36_v62 = vsub.s32 1, %v35_v57 }
  0x12   :  { %v384_v31 = vpack.c.bf16 %v58_v29, %v57_v28  ;;  %v59_v34 = vld [vmem:[%s591_s1 + $0x50] sm:$0xff]  ;;  %v60_v35 = vld [vmem:[%s591_s1 + $0x58] sm:$0xff]  ;;  %v363_v36 = vpack.c.bf16 %v76_v33, %v75_v32  ;;  %v77_v38 = vld [vmem:[%s592_s2 + $0x60] sm:$0xff] }
  0x13   :  { %v387_v37 = vpack.c.bf16 %v60_v35, %v59_v34  ;;  %v78_v39 = vld [vmem:[%s592_s2 + $0x68] sm:$0xff]  ;;  %v61_v40 = vld [vmem:[%s591_s1 + $0x60] sm:$0xff]  ;;  %v79_v44 = vld [vmem:[%s592_s2 + $0x70] sm:$0xff] }
  0x14   :  { %355 = vmatpush3.bf16.xpose.msra.mxu0 %v354_v18  ;;  %v62_v41 = vld [vmem:[%s591_s1 + $0x68] sm:$0xff]  ;;  %v366_v42 = vpack.c.bf16 %v78_v39, %v77_v38  ;;  %v80_v45 = vld [vmem:[%s592_s2 + $0x78] sm:$0xff]  ;;  %v63_v46 = vld [vmem:[%s591_s1 + $0x70] sm:$0xff] }
  0x15   :  { %379 = vmatpush3.bf16.xpose.msra.mxu1 %v378_v19  ;;  %356 = vmatprep.subr.bf16.mxu0 %v423_v3  ;;  %v390_v43 = vpack.c.bf16 %v62_v41, %v61_v40  ;;  %v64_v47 = vld [vmem:[%s591_s1 + $0x78] sm:$0xff]  ;;  %v369_v48 = vpack.c.bf16 %v80_v45, %v79_v44  ;;  %v39_v50 = vld [vmem:[%s590_s0] sm:$0xff]  ;;  %s426_s0 = smov [#allocation2]  }
  0x16   :  { %380 = vmatprep.subr.bf16.mxu1 %v423_v3  ;;  %v393_v49 = vpack.c.bf16 %v64_v47, %v63_v46  ;;  %v242_v51 = vld [vmem:[%s593_s3] ss:$0 sm:$0xff]  ;;  %s234_s1 = sshll.u32 %s426_s0, 4  ;;  %s235_s1 = int_to_ptr.vmem [resolvable:$true] %s234_s1 }
  0x17   :  { %v47_v52 = vmul.f32 %v242_v51, %v39_v50  ;;  %v21_v53 = vld [vmem:[%s594_s4] sm:$0x7]  ;;  %s399_s3 = scalar_lea.vmem %s235_s1, 128  ;;  %p404_p1 = scmp.lt.s32.totalorder %s235_s1, %s235_s1 }
  0x18   :  { %v27_v54 = vrot.slane %v21_v53, 6  ;;  %v154_v60 = vrot.slane %v21_v53, %v153_v59  ;;  %p400_p0 = scmp.ne.s32.totalorder %s235_s1, %s399_s3  ;;  %p405_p2 = scmp.lt.s32.totalorder %s399_s3, %s399_s3 }
  0x1a   :  { %v29_v56 = vmul.f32 %v27_v54, %v21_v53  ;;  %p406_p3 = por %p405_p2, %p404_p1 }
  0x1c   :  { %358 = vmatpush3.bf16.xpose.msra.mxu0 %v357_v24  ;;  %v31_v58 = vrot.slane %v29_v56, 1  ;;  %p407_p4 = pnand %p406_p3, %p400_p0 }
  0x1d   :  { %382 = vmatpush3.bf16.xpose.msra.mxu1 %v381_v25  ;;  %359 = vmatprep.subr.bf16.mxu0 %v423_v3 }
  0x1e   :  { %383 = vmatprep.subr.bf16.mxu1 %v423_v3  ;;  %v33_v61 = vadd.f32 %v31_v58, %v21_v53 }
  0x20   :  { %v37_v2 = vrot.slane %v33_v61, %v36_v62 }
  0x24   :  { %361 = vmatpush3.bf16.xpose.msra.mxu0 %v360_v30 }
  0x25   :  { %385 = vmatpush3.bf16.xpose.msra.mxu1 %v384_v31  ;;  %362 = vmatprep.subr.bf16.mxu0 %v423_v3 }
  0x26   :  { %386 = vmatprep.subr.bf16.mxu1 %v423_v3 }
  0x2c   :  { %364 = vmatpush3.bf16.xpose.msra.mxu0 %v363_v36 }
  0x2d   :  { %388 = vmatpush3.bf16.xpose.msra.mxu1 %v387_v37  ;;  %365 = vmatprep.subr.bf16.mxu0 %v423_v3 }
  0x2e   :  { %389 = vmatprep.subr.bf16.mxu1 %v423_v3 }
  0x34   :  { %367 = vmatpush3.bf16.xpose.msra.mxu0 %v366_v42 }
  0x35   :  { %391 = vmatpush3.bf16.xpose.msra.mxu1 %v390_v43  ;;  %368 = vmatprep.subr.bf16.mxu0 %v423_v3 }
  0x36   :  { %392 = vmatprep.subr.bf16.mxu1 %v423_v3 }
  0x3c   :  { %370 = vmatpush3.bf16.xpose.msra.mxu0 %v369_v48 }
  0x3d   :  { %394 = vmatpush3.bf16.xpose.msra.mxu1 %v393_v49 }
  0x43   :  { %310 = vmatmul.mubr.f32.vlgmr.msra.gmra.mrb[0].mxu0 %v47_v52 }
  0x44   :  { %345 = vmatmul.mubr.f32.vlgmr.msra.gmra.mrb[0].mxu1 %v39_v50 }
 0x116   :  { %v147_v63 = vpop.f32.mrb[0].mxu0 }
 0x117   :  { %v155_v0 = vmul.f32 %v154_v60, %v147_v63  ;;  %v311_v1 = vpop.f32.mrb[1].mxu0  ;;  %v222_v3 = vpop.f32.mrb[0].mxu1 }
 0x118   :  { %v346_v4 = vpop.f32.mrb[1].mxu1 }
 0x119   :  { %v223_v5 = vadd.f32 %v222_v3, %v155_v0 }
 0x11b   :  { %v226_v6 = vadd.f32 %v223_v5, %v37_v2 }
 0x11d   :  { %227 = vst [vmem:[#allocation2] sm:$0xff] %v226_v6 }
 0x11e   :  { %410 = shalt.err (!%p407_p4)
}
 0x11f   :  { %s411_s13 = scalar_lea.hbm %s595_s5, 128 }
 0x120   :  { %p412_p5 = scmp.ne.s32.totalorder %s595_s5, %s411_s13  ;;  %p415_p6 = scmp.lt.u32.totalorder %s411_s13, %s595_s5 }
 0x122   :  { %p417_p7 = pnand %p415_p6, %p412_p5 }
 0x124   :  { %420 = shalt.err (!%p417_p7)
}
 0x125   :  { %237 = dma.vmem_to_hbm [thread:$0]  %s235_s1, 128, %s595_s5, [#allocation3]  }
 0x126   :  { %421 = dma.done.wait [#allocation3], 128  }
 0x127   :  { %422 = vsyncadd [#allocation3], 4294967168 }
 0x128   :  { %241 = vsyncpa [#allocation3], 1 }

</bundles_post_ra>
